<compile_context>
chip_gen: v6e
topology: v6e:2x2x1
jax: 0.10.0
libtpu: 0.0.40
codegen_flags: <defaults>
</compile_context>

<pallas_src>
import math

import jax
import jax.numpy as jnp
from jax.experimental import pallas as pl
from jax.experimental.pallas import tpu as pltpu

SIGMA_INIT = -2.0
FEAT = 25          # model3_m is (25, 2) -> x must be (B, 25)
OUT = 2
NCH = 4            # fused pre-activation channels: [r3_0, r3_1, r2_0, r2_1]


# ----------------------------- parameters ---------------------------------

def _xavier_uniform(key, shape):
    # torch.nn.init.xavier_uniform_ on a 2-D tensor: fan_out = shape[0], fan_in = shape[1]
    fan_out, fan_in = shape
    bound = math.sqrt(6.0 / (fan_in + fan_out))
    return jax.random.uniform(key, shape, jnp.float32, -bound, bound)


def init_params(key):
    k2, k3, ksm = jax.random.split(key, 3)
    return dict(
        model1_m=jnp.ones((2,), jnp.float32),
        model2_m=_xavier_uniform(k2, (1, 2)),
        model3_m=_xavier_uniform(k3, (FEAT, 2)),
        model_sm_m=_xavier_uniform(ksm, (2, 2)),
        model1_s=jnp.full((2,), SIGMA_INIT, jnp.float32),
        model2_s=jnp.full((1, 2), SIGMA_INIT, jnp.float32),
        model3_s=jnp.full((FEAT, 2), SIGMA_INIT, jnp.float32),
        model_sm_s=jnp.full((2, 2), SIGMA_INIT, jnp.float32),
        gamma=jnp.ones((3,), jnp.float32),
        log_temp=jnp.zeros((1,), jnp.float32),
    )


# ------------------------------- kernel ------------------------------------

def _nvgs_kernel(cb_ref, x_ref, wbig_ref, o_ref):
    # cb_ref   : SMEM (10,) f32 — coef[j, c] at 4*j + c (j = output idx, c = channel),
    #            bias[j] at 8 + j.  coef folds alpha1/alpha2 into wsm; bias is the
    #            batch-invariant (tanh(e1) * alpha0) @ wsm row.
    # x_ref    : VMEM (TILE_B, 25)   input rows (batch tile)
    # wbig_ref : VMEM (25, 4)        [w3 | w2-in-row-0] fused weights
    # o_ref    : VMEM (2, TILE_B)    logits, lane-dense (transposed) layout
    pre = jnp.dot(x_ref[...], wbig_ref[...],
                  preferred_element_type=jnp.float32)          # (TILE_B, 4) on the MXU

    # Transpose the small pre-activation once (XLU) so the tanh, the folded
    # (2 x 4) output combine and the store are all lane-dense.
    t = jnp.tanh(pltpu.einshape("bc->cb", pre))                # (4, TILE_B)
    t0, t1, t2, t3 = t[0:1, :], t[1:2, :], t[2:3, :], t[3:4, :]

    row0 = (cb_ref[0] * t0 + cb_ref[1] * t1 +
            cb_ref[2] * t2 + cb_ref[3] * t3 + cb_ref[8])
    row1 = (cb_ref[4] * t0 + cb_ref[5] * t1 +
            cb_ref[6] * t2 + cb_ref[7] * t3 + cb_ref[9])
    o_ref[...] = jnp.concatenate([row0, row1], axis=0)         # (2, TILE_B)


# ------------------------------- wrapper ------------------------------------

def _pick_tile(batch, tile_b):
    """Batch-tile size and grid length.

    * Small batches: one exact block (rounded up to a sublane multiple of 8).
    * Large batches: multiple-of-128 lane-dense tiles with >= 2 grid steps so
      dimension_semantics=("parallel",) can split work across v7x's two TCs.
      The trailing block may be ragged (clipped DMA; garbage rows sliced off).
    """
    if batch <= 256:
        return ((batch + 7) // 8) * 8, 1
    tile_b = max(128, (tile_b // 128) * 128)
    half = ((((batch + 1) // 2) + 127) // 128) * 128
    tile = min(tile_b, half)
    return tile, pl.cdiv(batch, tile)


def nvgs_forward(params, x, key, *, tile_b=2048):
    """Stochastic forward pass (the `self.stochastic = True` branch)."""
    B = x.shape[0]
    kg, k1, k2, k3, ksm = jax.random.split(key, 5)

    # RelaxedOneHotCategorical(temp=exp(log_temp), logits=gamma).rsample() + 0.05
    temp = jnp.exp(params["log_temp"])[0]
    u = jax.random.uniform(kg, (3,), jnp.float32, 1e-10, 1.0)
    gumbel = -jnp.log(-jnp.log(u))
    alpha = jax.nn.softmax((params["gamma"] + gumbel) / temp) + 0.05     # (3,)

    # Normal(m, exp(s)).rsample() for each weight group (reparameterized).
    e1 = params["model1_m"] + jnp.exp(params["model1_s"]) * jax.random.normal(k1, (2,))
    w2 = params["model2_m"] + jnp.exp(params["model2_s"]) * jax.random.normal(k2, (1, 2))
    w3 = params["model3_m"] + jnp.exp(params["model3_s"]) * jax.random.normal(k3, (FEAT, 2))
    wsm = params["model_sm_m"] + jnp.exp(params["model_sm_s"]) * jax.random.normal(ksm, (2, 2))

    # Batch-invariant r1 path hoisted to a 2-scalar bias (the wsm matmul is linear).
    bias_row = (jnp.tanh(e1) * alpha[0]) @ wsm                           # (2,)

    # Fuse r2 into the main MXU matmul: x @ [w3 | w2-in-row-0] -> (B, 4)
    #   columns 0:2 = x @ w3 pre-act, columns 2:4 = x[:, :1] @ w2 pre-act.
    w2_pad = jnp.zeros((FEAT, OUT), jnp.float32).at[0, :].set(w2[0])
    wbig = jnp.concatenate([w3, w2_pad], axis=1)                         # (25, 4)

    # Fold alpha1/alpha2 and wsm into the 8 output-combine coefficients:
    #   out[j] = sum_c coef[j, c] * tanh(pre)[c] + bias[j]
    coef = jnp.concatenate([alpha[2] * wsm, alpha[1] * wsm], axis=0).T   # (2, 4) [j, c]
    cb = jnp.concatenate([coef.reshape(-1), bias_row]).astype(jnp.float32)  # (10,) -> SMEM

    # Do NOT force-cast x here (a wrapper cast is a full extra HBM pass over the
    # dominant input); bf16 x is accepted directly, MXU accumulates in f32.
    wbig = wbig.astype(x.dtype)

    tile, grid_n = _pick_tile(B, tile_b)
    b_out = tile * grid_n          # output allocated at padded size; sliced below
    if grid_n == 1 and tile != B:
        # Tiny batch only: round rows up to a multiple of 8 (negligible copy)
        # so in-kernel shapes stay aligned.  Large batches are never padded.
        x = jnp.pad(x, ((0, tile - B), (0, 0)))

    out_t = pl.pallas_call(
        _nvgs_kernel,
        out_shape=jax.ShapeDtypeStruct((OUT, b_out), jnp.float32),
        grid=(grid_n,),
        in_specs=[
            pl.BlockSpec(memory_space=pltpu.MemorySpace.SMEM),   # cb   (whole, scalars)
            pl.BlockSpec((tile, FEAT), lambda i: (i, 0)),        # x    (batch tile)
            pl.BlockSpec((FEAT, NCH), lambda i: (0, 0)),         # wbig (whole)
        ],
        out_specs=pl.BlockSpec((OUT, tile), lambda i: (0, i)),
        compiler_params=pltpu.CompilerParams(
            dimension_semantics=("parallel",)),
    )(cb, x, wbig)

    logits = out_t[:, :B].T                                      # (B, 2)
    return logits, (alpha, e1, w2, w3, wsm)


def nvgs_forward_ref(x, alpha, e1, w2, w3, wsm):
    """Pure-JAX reference of the stochastic forward (same sampled weights)."""
    x = x.astype(jnp.float32)
    r1 = jnp.tanh(e1)                                    # (2,)
    r2 = jnp.tanh(x[:, :1] @ w2)                         # (B, 2)
    r3 = jnp.tanh(x @ w3)                                # (B, 2)
    mix = r1 * alpha[0] + r2 * alpha[1] + r3 * alpha[2]
    return mix @ wsm


# --------------------------------- main -------------------------------------

if __name__ == "__main__":
    key = jax.random.PRNGKey(0)
    kparam, kx, kx2, kx3, ksample = jax.random.split(key, 5)

    params = init_params(kparam)

    # Small batch: single exact block.
    B = 8
    x = jax.random.normal(kx, (B, FEAT), jnp.float32)
    logits, (alpha, e1, w2, w3, wsm) = nvgs_forward(params, x, ksample)
    logits = jax.block_until_ready(logits)
    ref = nvgs_forward_ref(x, alpha, e1, w2, w3, wsm)
    assert logits.shape == (B, OUT)
    assert jnp.allclose(logits, ref, atol=1e-5, rtol=1e-5), (logits, ref)

    # Odd small batch: exercises the round-up-to-8 single-block path.
    B2 = 37
    x2 = jax.random.normal(kx2, (B2, FEAT), jnp.float32)
    logits2, s2 = nvgs_forward(params, x2, ksample)
    logits2 = jax.block_until_ready(logits2)
    ref2 = nvgs_forward_ref(x2, *s2)
    assert logits2.shape == (B2, OUT)
    assert jnp.allclose(logits2, ref2, atol=1e-5, rtol=1e-5), (logits2, ref2)

    # Multi-tile grid: exercises the lane-dense tiled output path
    # (3 steps of 128 rows; on v7x the "parallel" axis splits across both TCs).
    B3 = 384
    x3 = jax.random.normal(kx3, (B3, FEAT), jnp.float32)
    logits3, s3 = nvgs_forward(params, x3, ksample, tile_b=128)
    logits3 = jax.block_until_ready(logits3)
    ref3 = nvgs_forward_ref(x3, *s3)
    assert logits3.shape == (B3, OUT)
    assert jnp.allclose(logits3, ref3, atol=1e-5, rtol=1e-5), (logits3, ref3)

    print("KERNEL_OK")
</pallas_src>

<mosaic_0001>
module attributes {stable_mosaic.version = 11 : i64} {
  func.func @_nvgs_kernel(%arg0: i32, %arg1: memref<10xf32, #tpu.memory_space<smem>>, %arg2: memref<8x25xf32, #tpu.memory_space<vmem>>, %arg3: memref<25x4xf32, #tpu.memory_space<vmem>>, %arg4: memref<2x8xf32, #tpu.memory_space<vmem>>) attributes {dimension_semantics = [#tpu.dimension_semantics<parallel>], iteration_bounds = array<i64: 1>, scalar_prefetch = 0 : i64, scratch_operands = 0 : i64, tpu.core_type = #tpu.core_type<tc>, window_params = [{transform_indices = @transform_0, window_bounds = array<i64: 10>}, {transform_indices = @transform_1, window_bounds = array<i64: 8, 25>}, {pipeline_mode = #tpu.pipeline_mode<synchronous>, transform_indices = @transform_2, window_bounds = array<i64: 25, 4>}, {transform_indices = @transform_3, window_bounds = array<i64: 2, 8>}]} {
    %c0 = arith.constant 0 : index
    %c0_0 = arith.constant 0 : index
    %0 = vector.load %arg2[%c0, %c0_0] : memref<8x25xf32, #tpu.memory_space<vmem>>, vector<8x25xf32>
    %c0_1 = arith.constant 0 : index
    %c0_2 = arith.constant 0 : index
    %1 = vector.load %arg3[%c0_1, %c0_2] : memref<25x4xf32, #tpu.memory_space<vmem>>, vector<25x4xf32>
    %cst = arith.constant dense<0.000000e+00> : vector<8x4xf32>
    %2 = tpu.matmul %0, %1, %cst {dimension_numbers = #tpu.dot_dimension_numbers<[1], [0], [0], [1], [0, 0, 1, 1], [], []>} : vector<8x25xf32>, vector<25x4xf32>, vector<8x4xf32> -> vector<8x4xf32>
    %3 = tpu.transpose %2, [1, 0] : vector<8x4xf32> -> vector<4x8xf32>
    %4 = math.tanh %3 : vector<4x8xf32>
    %5 = vector.extract_strided_slice %4 {offsets = [0, 0], sizes = [1, 8], strides = [1, 1]} : vector<4x8xf32> to vector<1x8xf32>
    %6 = vector.extract_strided_slice %4 {offsets = [1, 0], sizes = [1, 8], strides = [1, 1]} : vector<4x8xf32> to vector<1x8xf32>
    %7 = vector.extract_strided_slice %4 {offsets = [2, 0], sizes = [1, 8], strides = [1, 1]} : vector<4x8xf32> to vector<1x8xf32>
    %8 = vector.extract_strided_slice %4 {offsets = [3, 0], sizes = [1, 8], strides = [1, 1]} : vector<4x8xf32> to vector<1x8xf32>
    %c0_3 = arith.constant 0 : index
    %9 = memref.load %arg1[%c0_3] : memref<10xf32, #tpu.memory_space<smem>>
    %10 = vector.broadcast %9 : f32 to vector<1x8xf32>
    %11 = arith.mulf %10, %5 : vector<1x8xf32>
    %c1 = arith.constant 1 : index
    %12 = memref.load %arg1[%c1] : memref<10xf32, #tpu.memory_space<smem>>
    %13 = vector.broadcast %12 : f32 to vector<1x8xf32>
    %14 = arith.mulf %13, %6 : vector<1x8xf32>
    %15 = arith.addf %11, %14 : vector<1x8xf32>
    %c2 = arith.constant 2 : index
    %16 = memref.load %arg1[%c2] : memref<10xf32, #tpu.memory_space<smem>>
    %17 = vector.broadcast %16 : f32 to vector<1x8xf32>
    %18 = arith.mulf %17, %7 : vector<1x8xf32>
    %19 = arith.addf %15, %18 : vector<1x8xf32>
    %c3 = arith.constant 3 : index
    %20 = memref.load %arg1[%c3] : memref<10xf32, #tpu.memory_space<smem>>
    %21 = vector.broadcast %20 : f32 to vector<1x8xf32>
    %22 = arith.mulf %21, %8 : vector<1x8xf32>
    %23 = arith.addf %19, %22 : vector<1x8xf32>
    %c8 = arith.constant 8 : index
    %24 = memref.load %arg1[%c8] : memref<10xf32, #tpu.memory_space<smem>>
    %25 = vector.broadcast %24 : f32 to vector<1x8xf32>
    %26 = arith.addf %23, %25 : vector<1x8xf32>
    %c4 = arith.constant 4 : index
    %27 = memref.load %arg1[%c4] : memref<10xf32, #tpu.memory_space<smem>>
    %28 = vector.broadcast %27 : f32 to vector<1x8xf32>
    %29 = arith.mulf %28, %5 : vector<1x8xf32>
    %c5 = arith.constant 5 : index
    %30 = memref.load %arg1[%c5] : memref<10xf32, #tpu.memory_space<smem>>
    %31 = vector.broadcast %30 : f32 to vector<1x8xf32>
    %32 = arith.mulf %31, %6 : vector<1x8xf32>
    %33 = arith.addf %29, %32 : vector<1x8xf32>
    %c6 = arith.constant 6 : index
    %34 = memref.load %arg1[%c6] : memref<10xf32, #tpu.memory_space<smem>>
    %35 = vector.broadcast %34 : f32 to vector<1x8xf32>
    %36 = arith.mulf %35, %7 : vector<1x8xf32>
    %37 = arith.addf %33, %36 : vector<1x8xf32>
    %c7 = arith.constant 7 : index
    %38 = memref.load %arg1[%c7] : memref<10xf32, #tpu.memory_space<smem>>
    %39 = vector.broadcast %38 : f32 to vector<1x8xf32>
    %40 = arith.mulf %39, %8 : vector<1x8xf32>
    %41 = arith.addf %37, %40 : vector<1x8xf32>
    %c9 = arith.constant 9 : index
    %42 = memref.load %arg1[%c9] : memref<10xf32, #tpu.memory_space<smem>>
    %43 = vector.broadcast %42 : f32 to vector<1x8xf32>
    %44 = arith.addf %41, %43 : vector<1x8xf32>
    %45 = tpu.concatenate %26, %44 in 0 : vector<1x8xf32>, vector<1x8xf32> -> vector<2x8xf32>
    %c0_4 = arith.constant 0 : index
    %c0_5 = arith.constant 0 : index
    %46 = vector.load %arg4[%c0_4, %c0_5] : memref<2x8xf32, #tpu.memory_space<vmem>>, vector<2x8xf32>
    tpu.vector_store %arg4[%c0_4, %c0_5], %45 {strides = array<i32>} : memref<2x8xf32, #tpu.memory_space<vmem>>, vector<2x8xf32>,
    return
  }
  func.func @transform_0(%arg0: i32) -> i32 {
    %c0_i32 = arith.constant 0 : i32
    %c0_i32_0 = arith.constant 0 : i32
    return %c0_i32 : i32
  }
  func.func @transform_1(%arg0: i32) -> (i32, i32) {
    %c0_i32 = arith.constant 0 : i32
    %c0_i32_0 = arith.constant 0 : i32
    return %arg0, %c0_i32 : i32, i32
  }
  func.func @transform_2(%arg0: i32) -> (i32, i32) {
    %c0_i32 = arith.constant 0 : i32
    %c0_i32_0 = arith.constant 0 : i32
    %c0_i32_1 = arith.constant 0 : i32
    return %c0_i32, %c0_i32_0 : i32, i32
  }
  func.func @transform_3(%arg0: i32) -> (i32, i32) {
    %c0_i32 = arith.constant 0 : i32
    %c0_i32_0 = arith.constant 0 : i32
    return %c0_i32, %arg0 : i32, i32
  }
}

</mosaic_0001>

<bundles_post_ra>
// kernel: tpu_custom_call.1
= control target key start
LH: loop header
LB: loop body
LE: loop exit
PB: predicated region body
PF: predicated region fallthrough
CT: control target
= control target key end

     0   :  { %8 = vsyncpa [#allocation4], 0  ;;  %s335_s0 = inlined_call_operand.vmem [shape: f32[10], index: 0, kind: input, shape index: {}]   ;;  %s336_s1 = inlined_call_operand.vmem [shape: f32[8,25], index: 1, kind: input, shape index: {}]   ;;  %s337_s2 = inlined_call_operand.vmem [shape: f32[25,4], index: 2, kind: input, shape index: {}]   ;;  %s338_s3 = inlined_call_operand.hbm [shape: f32[2,8], index: 3, kind: output, shape index: {}]  }
   0x1   :  { %9 = vsyncpa [#allocation3], 0  ;;  %s16_s14 = sshll.u32 %s335_s0, 4  ;;  %s17_s14 = int_to_ptr.vmem [resolvable:$true] %s16_s14 }
   0x2   :  { %s252_s15 = scalar_lea.vmem %s17_s14, 16  ;;  %p257_p1 = scmp.lt.s32.totalorder %s17_s14, %s17_s14 }
   0x3   :  { %p253_p0 = scmp.ne.s32.totalorder %s17_s14, %s252_s15  ;;  %p258_p2 = scmp.lt.s32.totalorder %s252_s15, %s252_s15 }
   0x5   :  { %p259_p3 = por %p258_p2, %p257_p1 }
   0x7   :  { %p260_p4 = pnand %p259_p3, %p253_p0 }
   0x9   :  { %263 = shalt.err (!%p260_p4)
}
   0xa   :  { %s288_s16 = smov [#allocation2]  }
   0xb   :  { %19 = dma.vmem_to_smem %s17_s14, 16, %s288_s16, [#allocation4]  }
   0xc   :  { %284 = dma.done.wait [#allocation4], 16  }
   0xd   :  { %285 = vsyncadd [#allocation4], 4294967280 }
   0xe   :  { %27 = sfence }
   0xf   :  { %v32_v0 = vld [vmem:[%s337_s2 + $0x18] sm:$0x1]  ;;  %vm37_vm0 = vcmask 1040384   ;;  %v289_v1 = vmov 0.0   ;;  %v31_v2 = vld [vmem:[%s337_s2 + $0x10] sm:$0xff]  ;;  %vm290_vm1 = vmmov 0  }
  0x10   :  { %235 = vmatprep.subr.mxu0 %v289_v1  ;;  %243 = vmatprep.mubr.msk.f32.mxu0 %vm290_vm1, %v289_v1  ;;  %v30_v3 = vld [vmem:[%s337_s2 + $0x8] sm:$0xff]  ;;  %v29_v4 = vld [vmem:[%s337_s2] sm:$0xff]  ;;  %vm33_vm2 = vcmask 203776   ;;  %s144_s26 = sld [smem:[#allocation2]]  ;;  %s291_s7 = smov [#allocation5]   ;;  %vm202_vm3 = vcmask 58368  }
  0x11   :  { %236 = vmatpush3.msk.msra.mxu0 %vm37_vm0, %v32_v0  ;;  %v28_v5 = vld [vmem:[%s336_s1] sm:$0xff]  ;;  %s221_s27 = sld [smem:[#allocation2 + $0x1]]  ;;  %s210_s8 = sshll.u32 %s291_s7, 4  ;;  %s211_s8 = int_to_ptr.vmem [resolvable:$true] %s210_s8 }
  0x12   :  { %237 = vmatprep.subr.mxu0 %v289_v1  ;;  %s222_s28 = sld [smem:[#allocation2 + $0x2]]  ;;  %s264_s9 = scalar_lea.vmem %s211_s8, 32 }
  0x13   :  { %238 = vmatpush3.msra.mxu0 %v31_v2  ;;  %s223_s29 = sld [smem:[#allocation2 + $0x3]]  ;;  %p265_p5 = scmp.ne.s32.totalorder %s211_s8, %s264_s9 }
  0x14   :  { %239 = vmatprep.subr.mxu0 %v289_v1  ;;  %s226_s30 = sld [smem:[#allocation2 + $0x5]]  ;;  %p269_p6 = scmp.lt.s32.totalorder %s211_s8, %s211_s8 }
  0x15   :  { %240 = vmatpush3.msra.mxu0 %v30_v3  ;;  %s227_s2 = sld [smem:[#allocation2 + $0x6]]  ;;  %p270_p7 = scmp.lt.s32.totalorder %s264_s9, %s264_s9 }
  0x16   :  { %241 = vmatprep.subr.mxu0 %v289_v1  ;;  %s225_s4 = sld [smem:[#allocation2 + $0x4]]  ;;  %v145_v14 = vstv %s144_s26 }
  0x17   :  { %242 = vmatpush3.msra.mxu0 %v29_v4  ;;  %s228_s5 = sld [smem:[#allocation2 + $0x7]]  ;;  %v148_v9 = vstv %s221_s27  ;;  %p271_p8 = por %p270_p7, %p269_p6 }
  0x18   :  { %244 = vmatmul.mubr.msk.f32.vlgmr.msra.gmra.mxu0 %vm33_vm2, %v28_v5  ;;  %v155_v10 = vstv %s222_s28  ;;  %s229_s1 = sld [smem:[#allocation2 + $0x9]] }
  0x19   :  { %v162_v15 = vstv %s223_s29  ;;  %s224_s6 = sld [smem:[#allocation2 + $0x8]]  ;;  %p272_p9 = pnand %p271_p8, %p265_p5 }
  0x1a   :  { %v175_v11 = vstv %s226_s30 }
  0x1b   :  { %v182_v12 = vstv %s227_s2 }
  0x1c   :  { %v172_v18 = vstv %s225_s4 }
  0x1d   :  { %v189_v19 = vstv %s228_s5 }
  0x1e   :  { %v196_v36 = vstv %s229_s1 }
  0x1f   :  { %v169_v39 = vstv %s224_s6 }
  0xd8   :  { %v107_v6 = vpop.f32.mrf.mxu0 }
  0xd9   :  { %111 = vxpose.xlu0.b32.start.end [1/1] (short) (narrow) %v107_v6, 8 }
  0xda   :  { %v245_v7 = vpop.f32.mrf.mxu0 }
 0x155   :  { %v127_v8 = vpop.trf.xlu0 }
 0x156   :  { %250 = vtanh.f32 %v127_v8 }
 0x163   :  { %v251_v13 = vpop.eup %250 }
 0x164   :  { %v149_v16 = vmul.f32 %v251_v13, %v148_v9  ;;  %v156_v17 = vmul.f32 %v251_v13, %v155_v10  ;;  %v176_v20 = vmul.f32 %v251_v13, %v175_v11  ;;  %v183_v21 = vmul.f32 %v251_v13, %v182_v12 }
 0x165   :  { %v146_v22 = vmul.f32 %v251_v13, %v145_v14  ;;  %v163_v24 = vmul.f32 %v251_v13, %v162_v15  ;;  %v173_v25 = vmul.f32 %v251_v13, %v172_v18  ;;  %v190_v27 = vmul.f32 %v251_v13, %v189_v19 }
 0x166   :  { %v151_v23 = vrot.slane %v149_v16, 1  ;;  %v178_v26 = vrot.slane %v176_v20, 1  ;;  %v158_v29 = vrot.slane %v156_v17, 2  ;;  %v185_v31 = vrot.slane %v183_v21, 2 }
 0x167   :  { %v165_v33 = vrot.slane %v163_v24, 3  ;;  %v192_v35 = vrot.slane %v190_v27, 3 }
 0x168   :  { %v153_v28 = vadd.f32 %v151_v23, %v146_v22  ;;  %v180_v30 = vadd.f32 %v178_v26, %v173_v25 }
 0x16a   :  { %v160_v32 = vadd.f32 %v158_v29, %v153_v28  ;;  %v187_v34 = vadd.f32 %v185_v31, %v180_v30 }
 0x16c   :  { %v167_v37 = vadd.f32 %v165_v33, %v160_v32  ;;  %v194_v38 = vadd.f32 %v192_v35, %v187_v34 }
 0x16e   :  { %v197_v40 = vadd.f32 %v196_v36, %v194_v38  ;;  %v170_v41 = vadd.f32 %v169_v39, %v167_v37 }
 0x170   :  { %v199_v42 = vrot.slane %v197_v40, 7 }
 0x172   :  { %v201_v43 = vsel %vm37_vm0, %v170_v41, %v199_v42 }
 0x173   :  { %203 = vst.msk [vmem:[#allocation5] sm:$0x3] %vm202_vm3, %v201_v43 }
 0x174   :  { %275 = shalt.err (!%p272_p9)
}
 0x175   :  { %213 = dma.vmem_to_hbm [thread:$0]  %s211_s8, 32, %s338_s3, [#allocation3]  }
 0x176   :  { %286 = dma.done.wait [#allocation3], 32  }
 0x177   :  { %287 = vsyncadd [#allocation3], 4294967264 }
 0x178   :  { %217 = vsyncpa [#allocation3], 1 }
 0x179   :  { %218 = vsyncpa [#allocation4], 1 }

</bundles_post_ra>
